<compile_context>
chip_gen: v7x
topology: tpu7x:2x2x1
jax: 0.10.0
libtpu: 0.0.40
codegen_flags: <defaults>
</compile_context>

<pallas_src>
import jax
import jax.numpy as jnp
from jax.experimental import pallas as pl
from jax.experimental.pallas import tpu as pltpu


def dssm_kernel(qs_ref, ds_ref, q_tab_ref, d_tab_ref, sims_ref):
    # qs_ref    : (Lq, TB) int32   query token ids, batch on lanes
    # ds_ref    : (Ld, TB) int32   doc   token ids, batch on lanes
    # q_tab_ref : (E, Vq)  table dtype  query embedding table (transposed)
    # d_tab_ref : (E, Vd)  table dtype  doc   embedding table (transposed)
    # sims_ref  : (1, TB)  float32 cosine similarities (lane-dense)
    q_tab = q_tab_ref[...].astype(jnp.float32)   # (E, Vq)
    d_tab = d_tab_ref[...].astype(jnp.float32)   # (E, Vd)

    def rep(ids_ref, tab):
        """tanh(mean over L of table rows) for every batch lane -> (E, TB)."""
        L, _tb = ids_ref.shape
        _e, V = tab.shape
        ids = ids_ref[...]                                        # (L, TB) int32
        iota_v = jax.lax.broadcasted_iota(jnp.int32, (V, 1), 0)   # (V, 1)
        # Bag-of-words counts: counts[v, b] = #{l : ids[l, b] == v}
        # (out-of-range ids would contribute zero; nn.Embedding would raise)
        counts = jnp.zeros((V, ids.shape[1]), jnp.float32)
        for l in range(L):                                        # static unroll, L small
            eq = ids[l:l + 1, :] == iota_v                        # (V, TB) bool
            counts = counts + jnp.where(eq, jnp.float32(1.0), jnp.float32(0.0))
        # sum_l table[ids[l]]  ==  table^T @ counts  -> one MXU matmul, (E, TB)
        summed = jnp.dot(tab, counts, preferred_element_type=jnp.float32)
        return jnp.tanh(summed * jnp.float32(1.0 / L))

    q_rep = rep(qs_ref, q_tab)   # (E, TB)
    d_rep = rep(ds_ref, d_tab)   # (E, TB)

    # Cosine similarity with F.normalize(p=2, eps=1e-12) semantics, but done as
    # a scalar-per-row rescale: <q,d> / (max(||q||,eps) * max(||d||,eps)).
    eps = jnp.float32(1e-12)
    dot_qd = jnp.sum(q_rep * d_rep, axis=0, keepdims=True)                       # (1, TB)
    q_nrm = jnp.maximum(jnp.sqrt(jnp.sum(q_rep * q_rep, axis=0, keepdims=True)), eps)
    d_nrm = jnp.maximum(jnp.sqrt(jnp.sum(d_rep * d_rep, axis=0, keepdims=True)), eps)
    sims_ref[...] = dot_qd * pl.reciprocal(q_nrm * d_nrm, approx=False)          # (1, TB)


def dssm_forward(qs, ds, q_word_embeds, d_word_embeds, *, batch_tile=128):
    """Full SimpleDSSM.forward (default path). Returns sims of shape (B,)."""
    B, Lq = qs.shape
    _, Ld = ds.shape
    Vq, E = q_word_embeds.shape
    Vd, _ = d_word_embeds.shape

    TB = batch_tile
    num_tiles = pl.cdiv(B, TB)
    B_pad = num_tiles * TB
    pad = B_pad - B

    # Pad batch with token id 0 (valid row); padded sims are sliced off below.
    qs_p = jnp.pad(qs.astype(jnp.int32), ((0, pad), (0, 0)))
    ds_p = jnp.pad(ds.astype(jnp.int32), ((0, pad), (0, 0)))

    # Layout plumbing only: ids with batch on lanes, tables transposed so the
    # kernel matmul directly yields batch-on-lanes reps. Tables keep their
    # native dtype (upcast happens inside the kernel).
    qs_T = qs_p.T                 # (Lq, B_pad)
    ds_T = ds_p.T                 # (Ld, B_pad)
    q_tab_T = q_word_embeds.T     # (E, Vq)
    d_tab_T = d_word_embeds.T     # (E, Vd)

    # TODO(synk): tables are kept resident in VMEM (constant index_map); for
    # vocabularies too large to fit (~a few MiB/table on v7x's 64 MiB VMEM),
    # fall back to a DMA-gather (tables in pl.ANY + pltpu.make_async_copy) or
    # XLA's native gather.

    sims_padded = pl.pallas_call(
        dssm_kernel,
        out_shape=jax.ShapeDtypeStruct((1, B_pad), jnp.float32),
        grid=(num_tiles,),
        in_specs=[
            pl.BlockSpec((Lq, TB), lambda i: (0, i)),   # query ids tile
            pl.BlockSpec((Ld, TB), lambda i: (0, i)),   # doc ids tile
            pl.BlockSpec((E, Vq), lambda i: (0, 0)),    # query table (resident)
            pl.BlockSpec((E, Vd), lambda i: (0, 0)),    # doc table (resident)
        ],
        out_specs=pl.BlockSpec((1, TB), lambda i: (0, i)),   # lane-dense sims
        compiler_params=pltpu.CompilerParams(
            dimension_semantics=("parallel",)),              # megacore on v7x
    )(qs_T, ds_T, q_tab_T, d_tab_T)

    return sims_padded[0, :B]   # (B,)


if __name__ == "__main__":
    # Small shapes consistent with the module.
    B = 2            # batch
    Lq = 8           # query seq length
    Ld = 8           # doc seq length
    E = 32           # embed_dim
    Q_VOCAB = 50
    D_VOCAB = 60

    key = jax.random.PRNGKey(0)
    k_qemb, k_demb, k_qids, k_dids = jax.random.split(key, 4)

    # Deterministic parameter init (nn.Embedding default ~ N(0, 1)).
    q_word_embeds = jax.random.normal(k_qemb, (Q_VOCAB, E), dtype=jnp.float32)
    d_word_embeds = jax.random.normal(k_demb, (D_VOCAB, E), dtype=jnp.float32)
    # TODO(synk): crosslin (Linear(2E, 3)), dropout, batchnorm, VAT perturbation
    # and relax_cos are only used under non-default flags; default forward path
    # returns cosine sims, so they are not exercised here.

    # Deterministic token-id inputs.
    qs = jax.random.randint(k_qids, (B, Lq), 0, Q_VOCAB, dtype=jnp.int32)
    ds = jax.random.randint(k_dids, (B, Ld), 0, D_VOCAB, dtype=jnp.int32)

    sims = dssm_forward(qs, ds, q_word_embeds, d_word_embeds)
    sims = jax.block_until_ready(sims)

    # Pure-JAX reference check (same math outside Pallas).
    qs_emb = jnp.take(q_word_embeds, qs, axis=0)
    ds_emb = jnp.take(d_word_embeds, ds, axis=0)
    q_rep = jnp.tanh(jnp.mean(qs_emb, axis=1))
    d_rep = jnp.tanh(jnp.mean(ds_emb, axis=1))
    nq = q_rep / jnp.maximum(jnp.linalg.norm(q_rep, axis=1, keepdims=True), 1e-12)
    nd = d_rep / jnp.maximum(jnp.linalg.norm(d_rep, axis=1, keepdims=True), 1e-12)
    ref = jnp.sum(nq * nd, axis=1)

    assert sims.shape == (B,)
    assert jnp.allclose(sims, ref, atol=2e-5, rtol=2e-5)
    print("KERNEL_OK")
</pallas_src>

<mosaic_0001>
module attributes {stable_mosaic.version = 11 : i64} {
  func.func @dssm_kernel(%arg0: i32, %arg1: memref<8x128xi32, #tpu.memory_space<vmem>>, %arg2: memref<8x128xi32, #tpu.memory_space<vmem>>, %arg3: memref<32x50xf32, #tpu.memory_space<vmem>>, %arg4: memref<32x60xf32, #tpu.memory_space<vmem>>, %arg5: memref<1x128xf32, #tpu.memory_space<vmem>>) attributes {dimension_semantics = [#tpu.dimension_semantics<parallel>], iteration_bounds = array<i64: 1>, scalar_prefetch = 0 : i64, scratch_operands = 0 : i64, tpu.core_type = #tpu.core_type<tc>, window_params = [{transform_indices = @transform_0, window_bounds = array<i64: 8, 128>}, {transform_indices = @transform_1, window_bounds = array<i64: 8, 128>}, {pipeline_mode = #tpu.pipeline_mode<synchronous>, transform_indices = @transform_2, window_bounds = array<i64: 32, 50>}, {pipeline_mode = #tpu.pipeline_mode<synchronous>, transform_indices = @transform_3, window_bounds = array<i64: 32, 60>}, {transform_indices = @transform_4, window_bounds = array<i64: 1, 128>}]} {
    %c0 = arith.constant 0 : index
    %c0_0 = arith.constant 0 : index
    %0 = vector.load %arg3[%c0, %c0_0] : memref<32x50xf32, #tpu.memory_space<vmem>>, vector<32x50xf32>
    %c0_1 = arith.constant 0 : index
    %c0_2 = arith.constant 0 : index
    %1 = vector.load %arg4[%c0_1, %c0_2] : memref<32x60xf32, #tpu.memory_space<vmem>>, vector<32x60xf32>
    %c0_3 = arith.constant 0 : index
    %c0_4 = arith.constant 0 : index
    %2 = vector.load %arg1[%c0_3, %c0_4] : memref<8x128xi32, #tpu.memory_space<vmem>>, vector<8x128xi32>
    %3 = tpu.iota {dimensions = array<i32: 0>} : vector<50x1xi32>
    %cst = arith.constant 0.000000e+00 : f32
    %4 = vector.broadcast %cst : f32 to vector<50x128xf32>
    %5 = vector.extract_strided_slice %2 {offsets = [0, 0], sizes = [1, 128], strides = [1, 1]} : vector<8x128xi32> to vector<1x128xi32>
    %6 = vector.broadcast %5 : vector<1x128xi32> to vector<50x128xi32>
    %7 = vector.broadcast %3 : vector<50x1xi32> to vector<50x128xi32>
    %8 = arith.cmpi eq, %6, %7 : vector<50x128xi32>
    %cst_5 = arith.constant 1.000000e+00 : f32
    %cst_6 = arith.constant 0.000000e+00 : f32
    %9 = vector.broadcast %cst_5 : f32 to vector<50x128xf32>
    %10 = vector.broadcast %cst_6 : f32 to vector<50x128xf32>
    %11 = arith.select %8, %9, %10 : vector<50x128xi1>, vector<50x128xf32>
    %12 = arith.addf %4, %11 : vector<50x128xf32>
    %13 = vector.extract_strided_slice %2 {offsets = [1, 0], sizes = [1, 128], strides = [1, 1]} : vector<8x128xi32> to vector<1x128xi32>
    %14 = vector.broadcast %13 : vector<1x128xi32> to vector<50x128xi32>
    %15 = vector.broadcast %3 : vector<50x1xi32> to vector<50x128xi32>
    %16 = arith.cmpi eq, %14, %15 : vector<50x128xi32>
    %cst_7 = arith.constant 1.000000e+00 : f32
    %cst_8 = arith.constant 0.000000e+00 : f32
    %17 = vector.broadcast %cst_7 : f32 to vector<50x128xf32>
    %18 = vector.broadcast %cst_8 : f32 to vector<50x128xf32>
    %19 = arith.select %16, %17, %18 : vector<50x128xi1>, vector<50x128xf32>
    %20 = arith.addf %12, %19 : vector<50x128xf32>
    %21 = vector.extract_strided_slice %2 {offsets = [2, 0], sizes = [1, 128], strides = [1, 1]} : vector<8x128xi32> to vector<1x128xi32>
    %22 = vector.broadcast %21 : vector<1x128xi32> to vector<50x128xi32>
    %23 = vector.broadcast %3 : vector<50x1xi32> to vector<50x128xi32>
    %24 = arith.cmpi eq, %22, %23 : vector<50x128xi32>
    %cst_9 = arith.constant 1.000000e+00 : f32
    %cst_10 = arith.constant 0.000000e+00 : f32
    %25 = vector.broadcast %cst_9 : f32 to vector<50x128xf32>
    %26 = vector.broadcast %cst_10 : f32 to vector<50x128xf32>
    %27 = arith.select %24, %25, %26 : vector<50x128xi1>, vector<50x128xf32>
    %28 = arith.addf %20, %27 : vector<50x128xf32>
    %29 = vector.extract_strided_slice %2 {offsets = [3, 0], sizes = [1, 128], strides = [1, 1]} : vector<8x128xi32> to vector<1x128xi32>
    %30 = vector.broadcast %29 : vector<1x128xi32> to vector<50x128xi32>
    %31 = vector.broadcast %3 : vector<50x1xi32> to vector<50x128xi32>
    %32 = arith.cmpi eq, %30, %31 : vector<50x128xi32>
    %cst_11 = arith.constant 1.000000e+00 : f32
    %cst_12 = arith.constant 0.000000e+00 : f32
    %33 = vector.broadcast %cst_11 : f32 to vector<50x128xf32>
    %34 = vector.broadcast %cst_12 : f32 to vector<50x128xf32>
    %35 = arith.select %32, %33, %34 : vector<50x128xi1>, vector<50x128xf32>
    %36 = arith.addf %28, %35 : vector<50x128xf32>
    %37 = vector.extract_strided_slice %2 {offsets = [4, 0], sizes = [1, 128], strides = [1, 1]} : vector<8x128xi32> to vector<1x128xi32>
    %38 = vector.broadcast %37 : vector<1x128xi32> to vector<50x128xi32>
    %39 = vector.broadcast %3 : vector<50x1xi32> to vector<50x128xi32>
    %40 = arith.cmpi eq, %38, %39 : vector<50x128xi32>
    %cst_13 = arith.constant 1.000000e+00 : f32
    %cst_14 = arith.constant 0.000000e+00 : f32
    %41 = vector.broadcast %cst_13 : f32 to vector<50x128xf32>
    %42 = vector.broadcast %cst_14 : f32 to vector<50x128xf32>
    %43 = arith.select %40, %41, %42 : vector<50x128xi1>, vector<50x128xf32>
    %44 = arith.addf %36, %43 : vector<50x128xf32>
    %45 = vector.extract_strided_slice %2 {offsets = [5, 0], sizes = [1, 128], strides = [1, 1]} : vector<8x128xi32> to vector<1x128xi32>
    %46 = vector.broadcast %45 : vector<1x128xi32> to vector<50x128xi32>
    %47 = vector.broadcast %3 : vector<50x1xi32> to vector<50x128xi32>
    %48 = arith.cmpi eq, %46, %47 : vector<50x128xi32>
    %cst_15 = arith.constant 1.000000e+00 : f32
    %cst_16 = arith.constant 0.000000e+00 : f32
    %49 = vector.broadcast %cst_15 : f32 to vector<50x128xf32>
    %50 = vector.broadcast %cst_16 : f32 to vector<50x128xf32>
    %51 = arith.select %48, %49, %50 : vector<50x128xi1>, vector<50x128xf32>
    %52 = arith.addf %44, %51 : vector<50x128xf32>
    %53 = vector.extract_strided_slice %2 {offsets = [6, 0], sizes = [1, 128], strides = [1, 1]} : vector<8x128xi32> to vector<1x128xi32>
    %54 = vector.broadcast %53 : vector<1x128xi32> to vector<50x128xi32>
    %55 = vector.broadcast %3 : vector<50x1xi32> to vector<50x128xi32>
    %56 = arith.cmpi eq, %54, %55 : vector<50x128xi32>
    %cst_17 = arith.constant 1.000000e+00 : f32
    %cst_18 = arith.constant 0.000000e+00 : f32
    %57 = vector.broadcast %cst_17 : f32 to vector<50x128xf32>
    %58 = vector.broadcast %cst_18 : f32 to vector<50x128xf32>
    %59 = arith.select %56, %57, %58 : vector<50x128xi1>, vector<50x128xf32>
    %60 = arith.addf %52, %59 : vector<50x128xf32>
    %61 = vector.extract_strided_slice %2 {offsets = [7, 0], sizes = [1, 128], strides = [1, 1]} : vector<8x128xi32> to vector<1x128xi32>
    %62 = vector.broadcast %61 : vector<1x128xi32> to vector<50x128xi32>
    %63 = vector.broadcast %3 : vector<50x1xi32> to vector<50x128xi32>
    %64 = arith.cmpi eq, %62, %63 : vector<50x128xi32>
    %cst_19 = arith.constant 1.000000e+00 : f32
    %cst_20 = arith.constant 0.000000e+00 : f32
    %65 = vector.broadcast %cst_19 : f32 to vector<50x128xf32>
    %66 = vector.broadcast %cst_20 : f32 to vector<50x128xf32>
    %67 = arith.select %64, %65, %66 : vector<50x128xi1>, vector<50x128xf32>
    %68 = arith.addf %60, %67 : vector<50x128xf32>
    %cst_21 = arith.constant dense<0.000000e+00> : vector<32x128xf32>
    %69 = tpu.matmul %0, %68, %cst_21 {dimension_numbers = #tpu.dot_dimension_numbers<[1], [0], [0], [1], [0, 0, 1, 1], [], []>} : vector<32x50xf32>, vector<50x128xf32>, vector<32x128xf32> -> vector<32x128xf32>
    %cst_22 = arith.constant 1.250000e-01 : f32
    %70 = vector.broadcast %cst_22 : f32 to vector<32x128xf32>
    %71 = arith.mulf %69, %70 : vector<32x128xf32>
    %72 = math.tanh %71 : vector<32x128xf32>
    %c0_23 = arith.constant 0 : index
    %c0_24 = arith.constant 0 : index
    %73 = vector.load %arg2[%c0_23, %c0_24] : memref<8x128xi32, #tpu.memory_space<vmem>>, vector<8x128xi32>
    %74 = tpu.iota {dimensions = array<i32: 0>} : vector<60x1xi32>
    %cst_25 = arith.constant 0.000000e+00 : f32
    %75 = vector.broadcast %cst_25 : f32 to vector<60x128xf32>
    %76 = vector.extract_strided_slice %73 {offsets = [0, 0], sizes = [1, 128], strides = [1, 1]} : vector<8x128xi32> to vector<1x128xi32>
    %77 = vector.broadcast %76 : vector<1x128xi32> to vector<60x128xi32>
    %78 = vector.broadcast %74 : vector<60x1xi32> to vector<60x128xi32>
    %79 = arith.cmpi eq, %77, %78 : vector<60x128xi32>
    %cst_26 = arith.constant 1.000000e+00 : f32
    %cst_27 = arith.constant 0.000000e+00 : f32
    %80 = vector.broadcast %cst_26 : f32 to vector<60x128xf32>
    %81 = vector.broadcast %cst_27 : f32 to vector<60x128xf32>
    %82 = arith.select %79, %80, %81 : vector<60x128xi1>, vector<60x128xf32>
    %83 = arith.addf %75, %82 : vector<60x128xf32>
    %84 = vector.extract_strided_slice %73 {offsets = [1, 0], sizes = [1, 128], strides = [1, 1]} : vector<8x128xi32> to vector<1x128xi32>
    %85 = vector.broadcast %84 : vector<1x128xi32> to vector<60x128xi32>
    %86 = vector.broadcast %74 : vector<60x1xi32> to vector<60x128xi32>
    %87 = arith.cmpi eq, %85, %86 : vector<60x128xi32>
    %cst_28 = arith.constant 1.000000e+00 : f32
    %cst_29 = arith.constant 0.000000e+00 : f32
    %88 = vector.broadcast %cst_28 : f32 to vector<60x128xf32>
    %89 = vector.broadcast %cst_29 : f32 to vector<60x128xf32>
    %90 = arith.select %87, %88, %89 : vector<60x128xi1>, vector<60x128xf32>
    %91 = arith.addf %83, %90 : vector<60x128xf32>
    %92 = vector.extract_strided_slice %73 {offsets = [2, 0], sizes = [1, 128], strides = [1, 1]} : vector<8x128xi32> to vector<1x128xi32>
    %93 = vector.broadcast %92 : vector<1x128xi32> to vector<60x128xi32>
    %94 = vector.broadcast %74 : vector<60x1xi32> to vector<60x128xi32>
    %95 = arith.cmpi eq, %93, %94 : vector<60x128xi32>
    %cst_30 = arith.constant 1.000000e+00 : f32
    %cst_31 = arith.constant 0.000000e+00 : f32
    %96 = vector.broadcast %cst_30 : f32 to vector<60x128xf32>
    %97 = vector.broadcast %cst_31 : f32 to vector<60x128xf32>
    %98 = arith.select %95, %96, %97 : vector<60x128xi1>, vector<60x128xf32>
    %99 = arith.addf %91, %98 : vector<60x128xf32>
    %100 = vector.extract_strided_slice %73 {offsets = [3, 0], sizes = [1, 128], strides = [1, 1]} : vector<8x128xi32> to vector<1x128xi32>
    %101 = vector.broadcast %100 : vector<1x128xi32> to vector<60x128xi32>
    %102 = vector.broadcast %74 : vector<60x1xi32> to vector<60x128xi32>
    %103 = arith.cmpi eq, %101, %102 : vector<60x128xi32>
    %cst_32 = arith.constant 1.000000e+00 : f32
    %cst_33 = arith.constant 0.000000e+00 : f32
    %104 = vector.broadcast %cst_32 : f32 to vector<60x128xf32>
    %105 = vector.broadcast %cst_33 : f32 to vector<60x128xf32>
    %106 = arith.select %103, %104, %105 : vector<60x128xi1>, vector<60x128xf32>
    %107 = arith.addf %99, %106 : vector<60x128xf32>
    %108 = vector.extract_strided_slice %73 {offsets = [4, 0], sizes = [1, 128], strides = [1, 1]} : vector<8x128xi32> to vector<1x128xi32>
    %109 = vector.broadcast %108 : vector<1x128xi32> to vector<60x128xi32>
    %110 = vector.broadcast %74 : vector<60x1xi32> to vector<60x128xi32>
    %111 = arith.cmpi eq, %109, %110 : vector<60x128xi32>
    %cst_34 = arith.constant 1.000000e+00 : f32
    %cst_35 = arith.constant 0.000000e+00 : f32
    %112 = vector.broadcast %cst_34 : f32 to vector<60x128xf32>
    %113 = vector.broadcast %cst_35 : f32 to vector<60x128xf32>
    %114 = arith.select %111, %112, %113 : vector<60x128xi1>, vector<60x128xf32>
    %115 = arith.addf %107, %114 : vector<60x128xf32>
    %116 = vector.extract_strided_slice %73 {offsets = [5, 0], sizes = [1, 128], strides = [1, 1]} : vector<8x128xi32> to vector<1x128xi32>
    %117 = vector.broadcast %116 : vector<1x128xi32> to vector<60x128xi32>
    %118 = vector.broadcast %74 : vector<60x1xi32> to vector<60x128xi32>
    %119 = arith.cmpi eq, %117, %118 : vector<60x128xi32>
    %cst_36 = arith.constant 1.000000e+00 : f32
    %cst_37 = arith.constant 0.000000e+00 : f32
    %120 = vector.broadcast %cst_36 : f32 to vector<60x128xf32>
    %121 = vector.broadcast %cst_37 : f32 to vector<60x128xf32>
    %122 = arith.select %119, %120, %121 : vector<60x128xi1>, vector<60x128xf32>
    %123 = arith.addf %115, %122 : vector<60x128xf32>
    %124 = vector.extract_strided_slice %73 {offsets = [6, 0], sizes = [1, 128], strides = [1, 1]} : vector<8x128xi32> to vector<1x128xi32>
    %125 = vector.broadcast %124 : vector<1x128xi32> to vector<60x128xi32>
    %126 = vector.broadcast %74 : vector<60x1xi32> to vector<60x128xi32>
    %127 = arith.cmpi eq, %125, %126 : vector<60x128xi32>
    %cst_38 = arith.constant 1.000000e+00 : f32
    %cst_39 = arith.constant 0.000000e+00 : f32
    %128 = vector.broadcast %cst_38 : f32 to vector<60x128xf32>
    %129 = vector.broadcast %cst_39 : f32 to vector<60x128xf32>
    %130 = arith.select %127, %128, %129 : vector<60x128xi1>, vector<60x128xf32>
    %131 = arith.addf %123, %130 : vector<60x128xf32>
    %132 = vector.extract_strided_slice %73 {offsets = [7, 0], sizes = [1, 128], strides = [1, 1]} : vector<8x128xi32> to vector<1x128xi32>
    %133 = vector.broadcast %132 : vector<1x128xi32> to vector<60x128xi32>
    %134 = vector.broadcast %74 : vector<60x1xi32> to vector<60x128xi32>
    %135 = arith.cmpi eq, %133, %134 : vector<60x128xi32>
    %cst_40 = arith.constant 1.000000e+00 : f32
    %cst_41 = arith.constant 0.000000e+00 : f32
    %136 = vector.broadcast %cst_40 : f32 to vector<60x128xf32>
    %137 = vector.broadcast %cst_41 : f32 to vector<60x128xf32>
    %138 = arith.select %135, %136, %137 : vector<60x128xi1>, vector<60x128xf32>
    %139 = arith.addf %131, %138 : vector<60x128xf32>
    %cst_42 = arith.constant dense<0.000000e+00> : vector<32x128xf32>
    %140 = tpu.matmul %1, %139, %cst_42 {dimension_numbers = #tpu.dot_dimension_numbers<[1], [0], [0], [1], [0, 0, 1, 1], [], []>} : vector<32x60xf32>, vector<60x128xf32>, vector<32x128xf32> -> vector<32x128xf32>
    %cst_43 = arith.constant 1.250000e-01 : f32
    %141 = vector.broadcast %cst_43 : f32 to vector<32x128xf32>
    %142 = arith.mulf %140, %141 : vector<32x128xf32>
    %143 = math.tanh %142 : vector<32x128xf32>
    %144 = arith.mulf %72, %143 : vector<32x128xf32>
    %cst_44 = arith.constant dense<0.000000e+00> : vector<128xf32>
    %145 = vector.multi_reduction <add>, %144, %cst_44 [0] : vector<32x128xf32> to vector<128xf32>
    %146 = vector.shape_cast %145 : vector<128xf32> to vector<1x128xf32>
    %147 = arith.mulf %72, %72 : vector<32x128xf32>
    %cst_45 = arith.constant dense<0.000000e+00> : vector<128xf32>
    %148 = vector.multi_reduction <add>, %147, %cst_45 [0] : vector<32x128xf32> to vector<128xf32>
    %149 = vector.shape_cast %148 : vector<128xf32> to vector<1x128xf32>
    %150 = math.sqrt %149 : vector<1x128xf32>
    %cst_46 = arith.constant 9.99999996E-13 : f32
    %151 = vector.broadcast %cst_46 : f32 to vector<1x128xf32>
    %152 = arith.maximumf %150, %151 : vector<1x128xf32>
    %153 = arith.mulf %143, %143 : vector<32x128xf32>
    %cst_47 = arith.constant dense<0.000000e+00> : vector<128xf32>
    %154 = vector.multi_reduction <add>, %153, %cst_47 [0] : vector<32x128xf32> to vector<128xf32>
    %155 = vector.shape_cast %154 : vector<128xf32> to vector<1x128xf32>
    %156 = math.sqrt %155 : vector<1x128xf32>
    %cst_48 = arith.constant 9.99999996E-13 : f32
    %157 = vector.broadcast %cst_48 : f32 to vector<1x128xf32>
    %158 = arith.maximumf %156, %157 : vector<1x128xf32>
    %159 = arith.mulf %152, %158 : vector<1x128xf32>
    %160 = tpu.reciprocal %159 : vector<1x128xf32> -> vector<1x128xf32>
    %161 = arith.mulf %146, %160 : vector<1x128xf32>
    %c0_49 = arith.constant 0 : index
    %c0_50 = arith.constant 0 : index
    %162 = vector.load %arg5[%c0_49, %c0_50] : memref<1x128xf32, #tpu.memory_space<vmem>>, vector<1x128xf32>
    tpu.vector_store %arg5[%c0_49, %c0_50], %161 {strides = array<i32>} : memref<1x128xf32, #tpu.memory_space<vmem>>, vector<1x128xf32>,
    return
  }
  func.func @transform_0(%arg0: i32) -> (i32, i32) {
    %c0_i32 = arith.constant 0 : i32
    %c0_i32_0 = arith.constant 0 : i32
    return %c0_i32, %arg0 : i32, i32
  }
  func.func @transform_1(%arg0: i32) -> (i32, i32) {
    %c0_i32 = arith.constant 0 : i32
    %c0_i32_0 = arith.constant 0 : i32
    return %c0_i32, %arg0 : i32, i32
  }
  func.func @transform_2(%arg0: i32) -> (i32, i32) {
    %c0_i32 = arith.constant 0 : i32
    %c0_i32_0 = arith.constant 0 : i32
    %c0_i32_1 = arith.constant 0 : i32
    return %c0_i32, %c0_i32_0 : i32, i32
  }
  func.func @transform_3(%arg0: i32) -> (i32, i32) {
    %c0_i32 = arith.constant 0 : i32
    %c0_i32_0 = arith.constant 0 : i32
    %c0_i32_1 = arith.constant 0 : i32
    return %c0_i32, %c0_i32_0 : i32, i32
  }
  func.func @transform_4(%arg0: i32) -> (i32, i32) {
    %c0_i32 = arith.constant 0 : i32
    %c0_i32_0 = arith.constant 0 : i32
    return %c0_i32, %arg0 : i32, i32
  }
}

</mosaic_0001>

<bundles_post_ra>
// kernel: tpu_custom_call.1
= control target key start
LH: loop header
LB: loop body
LE: loop exit
PB: predicated region body
PF: predicated region fallthrough
CT: control target
= control target key end

     0   :  { %9 = vsyncpa [#allocation3], 0  ;;  %s1621_s0 = inlined_call_operand.hbm [shape: s32[8,128], index: 0, kind: input, shape index: {}]   ;;  %s1622_s1 = inlined_call_operand.hbm [shape: s32[8,128], index: 1, kind: input, shape index: {}]   ;;  %s1623_s2 = inlined_call_operand.hbm [shape: f32[32,50], index: 2, kind: input, shape index: {}]   ;;  %s1624_s3 = inlined_call_operand.hbm [shape: f32[32,60], index: 3, kind: input, shape index: {}]   ;;  %s1625_s4 = inlined_call_operand.hbm [shape: f32[1,128], index: 4, kind: output, shape index: {}]  }
   0x1   :  { %10 = vsyncpa [#allocation6], 0 }
   0x2   :  { %11 = vsyncpa [#allocation9], 0 }
   0x3   :  { %12 = vsyncpa [#allocation4], 0  ;;  %s1062_s15 = smov [#allocation5]   ;;  %s1063_s17 = smov [#allocation2]  }
   0x4   :  { %s29_s16 = sshll.u32 %s1062_s15, 4  ;;  %s19_s18 = sshll.u32 %s1063_s17, 4  ;;  %s30_s16 = int_to_ptr.vmem [resolvable:$true] %s29_s16  ;;  %s20_s18 = int_to_ptr.vmem [resolvable:$true] %s19_s18 }
   0x5   :  { %s944_s21 = scalar_lea.hbm %s1622_s1, 128 }
   0x6   :  { %p945_p0 = scmp.ne.s32.totalorder %s1622_s1, %s944_s21  ;;  %p948_p1 = scmp.lt.u32.totalorder %s944_s21, %s1622_s1 }
   0x8   :  { %p950_p2 = pnand %p948_p1, %p945_p0 }
   0xa   :  { %953 = shalt.err (!%p950_p2)
}
   0xb   :  { %s954_s26 = scalar_lea.vmem %s30_s16, 128  ;;  %p959_p4 = scmp.lt.s32.totalorder %s30_s16, %s30_s16 }
   0xc   :  { %p955_p3 = scmp.ne.s32.totalorder %s30_s16, %s954_s26  ;;  %p960_p5 = scmp.lt.s32.totalorder %s954_s26, %s954_s26 }
   0xe   :  { %p961_p6 = por %p960_p5, %p959_p4 }
  0x10   :  { %p962_p7 = pnand %p961_p6, %p955_p3 }
  0x12   :  { %965 = shalt.err (!%p962_p7)
}
  0x13   :  { %32 = dma.hbm_to_vmem [thread:$0]  %s1622_s1, 128, %s30_s16, [#allocation6]  }
  0x14   :  { %s966_s5 = scalar_lea.hbm %s1621_s0, 128 }
  0x15   :  { %p967_p8 = scmp.ne.s32.totalorder %s1621_s0, %s966_s5  ;;  %p970_p9 = scmp.lt.u32.totalorder %s966_s5, %s1621_s0 }
  0x17   :  { %p972_p10 = pnand %p970_p9, %p967_p8 }
  0x19   :  { %975 = shalt.err (!%p972_p10)
}
  0x1a   :  { %s976_s10 = scalar_lea.vmem %s20_s18, 128  ;;  %p981_p12 = scmp.lt.s32.totalorder %s20_s18, %s20_s18 }
  0x1b   :  { %p977_p11 = scmp.ne.s32.totalorder %s20_s18, %s976_s10  ;;  %p982_p13 = scmp.lt.s32.totalorder %s976_s10, %s976_s10 }
  0x1d   :  { %p983_p0 = por %p982_p13, %p981_p12 }
  0x1f   :  { %p984_p1 = pnand %p983_p0, %p977_p11 }
  0x21   :  { %987 = shalt.err (!%p984_p1)
}
  0x22   :  { %22 = dma.hbm_to_vmem [thread:$0]  %s1621_s0, 128, %s20_s18, [#allocation3]  }
  0x23   :  { %s1064_s12 = smov [#allocation7]   ;;  %s988_s16 = scalar_lea.hbm %s1623_s2, 512 }
  0x24   :  { %s38_s13 = sshll.u32 %s1064_s12, 4  ;;  %p989_p2 = scmp.ne.s32.totalorder %s1623_s2, %s988_s16  ;;  %s39_s13 = int_to_ptr.vmem [resolvable:$true] %s38_s13 }
  0x25   :  { %p992_p3 = scmp.lt.u32.totalorder %s988_s16, %s1623_s2 }
  0x27   :  { %p994_p4 = pnand %p992_p3, %p989_p2 }
  0x29   :  { %997 = shalt.err (!%p994_p4)
}
  0x2a   :  { %s998_s22 = scalar_lea.vmem %s39_s13, 512  ;;  %p1003_p6 = scmp.lt.s32.totalorder %s39_s13, %s39_s13 }
  0x2b   :  { %p999_p5 = scmp.ne.s32.totalorder %s39_s13, %s998_s22  ;;  %p1004_p7 = scmp.lt.s32.totalorder %s998_s22, %s998_s22 }
  0x2d   :  { %p1005_p8 = por %p1004_p7, %p1003_p6 }
  0x2f   :  { %p1006_p9 = pnand %p1005_p8, %p999_p5 }
  0x31   :  { %1009 = shalt.err (!%p1006_p9)
}
  0x32   :  { %s1065_s0 = smov 128   ;;  %s1066_s18 = smov 8  }
  0x33   :  { %44 = dma.hbm_to_vmem [thread:$0]  %s1623_s2, 512, %s39_s13, [#allocation6], %s1065_s0, %s1065_s0, %s1066_s18  }
  0x34   :  { %s1067_s25 = smov [#allocation8]   ;;  %s1010_s29 = scalar_lea.hbm %s1624_s3, 512 }
  0x35   :  { %s50_s26 = sshll.u32 %s1067_s25, 4  ;;  %p1011_p10 = scmp.ne.s32.totalorder %s1624_s3, %s1010_s29  ;;  %s51_s26 = int_to_ptr.vmem [resolvable:$true] %s50_s26 }
  0x36   :  { %p1014_p11 = scmp.lt.u32.totalorder %s1010_s29, %s1624_s3 }
  0x38   :  { %p1016_p12 = pnand %p1014_p11, %p1011_p10 }
  0x3a   :  { %1019 = shalt.err (!%p1016_p12)
}
  0x3b   :  { %s1020_s8 = scalar_lea.vmem %s51_s26, 512  ;;  %p1025_p0 = scmp.lt.s32.totalorder %s51_s26, %s51_s26 }
  0x3c   :  { %p1021_p13 = scmp.ne.s32.totalorder %s51_s26, %s1020_s8  ;;  %p1026_p1 = scmp.lt.s32.totalorder %s1020_s8, %s1020_s8 }
  0x3e   :  { %p1027_p2 = por %p1026_p1, %p1025_p0 }
  0x40   :  { %p1028_p3 = pnand %p1027_p2, %p1021_p13 }
  0x42   :  { %1031 = shalt.err (!%p1028_p3)
}
  0x43   :  { %56 = dma.hbm_to_vmem [thread:$0]  %s1624_s3, 512, %s51_s26, [#allocation9], %s1065_s0, %s1065_s0, %s1066_s18  }
  0x44   :  { %1054 = dma.done.wait [#allocation3], 128  }
  0x45   :  { %1055 = vsyncadd [#allocation3], 4294967168 }
  0x46   :  { %1056 = dma.done.wait [#allocation6], 640  }
  0x47   :  { %1057 = vsyncadd [#allocation6], 4294966656 }
  0x48   :  { %1058 = dma.done.wait [#allocation9], 512  }
  0x49   :  { %1059 = vsyncadd [#allocation9], 4294966784  ;;  %v78_v0 = vlaneseq  ;;  %vm286_vm0 = vcmask 408576   ;;  %vm622_vm1 = vcmask 490496   ;;  %v77_v13 = vld [vmem:[#allocation2] sm:$0xff]  ;;  %v69_v18 = vld [vmem:[#allocation7] sm:$0xff] }
  0x4a   :  { %855 = vmatprep.mubr.msk.f32.mxu0 %vm286_vm0, %v69_v18  ;;  %v73_v23 = vld [vmem:[#allocation8] sm:$0xff]  ;;  %v1068_v28 = vmov 0.0   ;;  %v396_v45 = vld [vmem:[#allocation5] sm:$0xff]  ;;  %s1070_s3 = smov [#allocation10]  }
  0x4b   :  { %v1144_v1 = vshrl.u32 %v78_v0, 7  ;;  %877 = vmatprep.mubr.msk.f32.mxu1 %vm622_vm1, %v73_v23  ;;  %s797_s10 = sshll.u32 %s1070_s3, 4  ;;  %s798_s10 = int_to_ptr.vmem [resolvable:$true] %s797_s10 }
  0x4c   :  { %s1032_s1 = scalar_lea.vmem %s798_s10, 16  ;;  %s1036_s11 = scalar_lea.vmem %s798_s10, 32 }
  0x4d   :  { %v88_v2 = vsub.s32 0, %v1144_v1  ;;  %v113_v3 = vsub.s32 1, %v1144_v1  ;;  %v138_v4 = vsub.s32 2, %v1144_v1  ;;  %v163_v5 = vsub.s32 3, %v1144_v1  ;;  %p1033_p4 = scmp.ne.s32.totalorder %s798_s10, %s1032_s1  ;;  %p1037_p5 = scmp.lt.s32.totalorder %s798_s10, %s798_s10 }
  0x4e   :  { %v188_v6 = vsub.s32 4, %v1144_v1  ;;  %v213_v7 = vsub.s32 5, %v1144_v1  ;;  %v238_v8 = vsub.s32 6, %v1144_v1  ;;  %v1154_v9 = vadd.s32 8, %v1144_v1  ;;  %p1038_p6 = scmp.lt.s32.totalorder %s1036_s11, %s1032_s1 }
  0x4f   :  { %v263_v10 = vsub.s32 7, %v1144_v1  ;;  %v1158_v11 = vadd.s32 16, %v1144_v1  ;;  %v1161_v12 = vadd.s32 24, %v1144_v1  ;;  %v1164_v14 = vadd.s32 32, %v1144_v1 }
  0x50   :  { %v1167_v15 = vadd.s32 40, %v1144_v1  ;;  %v1170_v16 = vadd.s32 48, %v1144_v1  ;;  %v1173_v17 = vadd.s32 56, %v1144_v1  ;;  %v1177_v19 = vrot.slane %v77_v13, %v88_v2  ;;  %p1039_p7 = por %p1038_p6, %p1037_p5 }
  0x51   :  { %v1181_v20 = vrot.slane %v77_v13, %v113_v3  ;;  %v1185_v21 = vrot.slane %v77_v13, %v138_v4  ;;  %v1189_v22 = vrot.slane %v77_v13, %v163_v5  ;;  %v1194_v24 = vrot.slane %v77_v13, %v188_v6 }
  0x52   :  { %v1198_v25 = vrot.slane %v77_v13, %v213_v7  ;;  %v1202_v26 = vrot.slane %v77_v13, %v238_v8  ;;  %v1206_v27 = vrot.slane %v77_v13, %v263_v10  ;;  %vm90_vm2 = vcmp.eq.s32.totalorder %v1177_v19, %v1144_v1  ;;  %p1040_p8 = pnand %p1039_p7, %p1033_p4 }
  0x53   :  { %vm91_vm3 = vcmp.eq.s32.totalorder %v1177_v19, %v1154_v9  ;;  %vm115_vm4 = vcmp.eq.s32.totalorder %v1181_v20, %v1144_v1  ;;  %vm116_vm5 = vcmp.eq.s32.totalorder %v1181_v20, %v1154_v9  ;;  %v97_v29 = vsel %vm90_vm2, 1.0, %v1068_v28 }
  0x54   :  { %v98_v30 = vsel %vm91_vm3, 1.0, %v1068_v28  ;;  %v122_v31 = vsel %vm115_vm4, 1.0, %v1068_v28  ;;  %v123_v32 = vsel %vm116_vm5, 1.0, %v1068_v28  ;;  %vm140_vm6 = vcmp.eq.s32.totalorder %v1185_v21, %v1144_v1 }
  0x55   :  { %v129_v33 = vadd.f32 %v122_v31, %v97_v29  ;;  %v130_v34 = vadd.f32 %v123_v32, %v98_v30  ;;  %vm141_vm7 = vcmp.eq.s32.totalorder %v1185_v21, %v1154_v9  ;;  %v147_v35 = vsel %vm140_vm6, 1.0, %v1068_v28 }
  0x56   :  { %v148_v36 = vsel %vm141_vm7, 1.0, %v1068_v28  ;;  %vm165_vm8 = vcmp.eq.s32.totalorder %v1189_v22, %v1144_v1  ;;  %vm166_vm9 = vcmp.eq.s32.totalorder %v1189_v22, %v1154_v9  ;;  %vm190_vm10 = vcmp.eq.s32.totalorder %v1194_v24, %v1144_v1 }
  0x57   :  { %v154_v37 = vadd.f32 %v147_v35, %v129_v33  ;;  %v155_v38 = vadd.f32 %v148_v36, %v130_v34  ;;  %v172_v39 = vsel %vm165_vm8, 1.0, %v1068_v28  ;;  %v173_v40 = vsel %vm166_vm9, 1.0, %v1068_v28 }
  0x58   :  { %vm191_vm11 = vcmp.eq.s32.totalorder %v1194_v24, %v1154_v9  ;;  %vm215_vm12 = vcmp.eq.s32.totalorder %v1198_v25, %v1144_v1  ;;  %vm216_vm13 = vcmp.eq.s32.totalorder %v1198_v25, %v1154_v9  ;;  %v197_v43 = vsel %vm190_vm10, 1.0, %v1068_v28 }
  0x59   :  { %v179_v41 = vadd.f32 %v172_v39, %v154_v37  ;;  %v180_v42 = vadd.f32 %v173_v40, %v155_v38  ;;  %v198_v44 = vsel %vm191_vm11, 1.0, %v1068_v28  ;;  %v222_v46 = vsel %vm215_vm12, 1.0, %v1068_v28 }
  0x5a   :  { %v223_v47 = vsel %vm216_vm13, 1.0, %v1068_v28  ;;  %vm240_vm14 = vcmp.eq.s32.totalorder %v1202_v26, %v1144_v1  ;;  %vm241_vm15 = vcmp.eq.s32.totalorder %v1202_v26, %v1154_v9  ;;  %vm265_vm2 = vcmp.eq.s32.totalorder %v1206_v27, %v1144_v1 }
  0x5b   :  { %v204_v48 = vadd.f32 %v197_v43, %v179_v41  ;;  %v205_v49 = vadd.f32 %v198_v44, %v180_v42  ;;  %v247_v50 = vsel %vm240_vm14, 1.0, %v1068_v28  ;;  %v248_v51 = vsel %vm241_vm15, 1.0, %v1068_v28 }
  0x5c   :  { %vm266_vm3 = vcmp.eq.s32.totalorder %v1206_v27, %v1154_v9  ;;  %v1257_v52 = vrot.slane %v396_v45, %v88_v2  ;;  %v1261_v53 = vrot.slane %v396_v45, %v113_v3  ;;  %v272_v56 = vsel %vm265_vm2, 1.0, %v1068_v28 }
  0x5d   :  { %v229_v54 = vadd.f32 %v222_v46, %v204_v48  ;;  %v230_v55 = vadd.f32 %v223_v47, %v205_v49  ;;  %v273_v57 = vsel %vm266_vm3, 1.0, %v1068_v28  ;;  %v1267_v58 = vrot.slane %v396_v45, %v138_v4 }
  0x5e   :  { %v1271_v59 = vrot.slane %v396_v45, %v163_v5  ;;  %v1275_v60 = vrot.slane %v396_v45, %v188_v6  ;;  %v1279_v61 = vrot.slane %v396_v45, %v213_v7  ;;  %v1283_v0 = vrot.slane %v396_v45, %v238_v8 }
  0x5f   :  { %v254_v62 = vadd.f32 %v247_v50, %v229_v54  ;;  %v255_v63 = vadd.f32 %v248_v51, %v230_v55  ;;  %v1287_v2 = vrot.slane %v396_v45, %v263_v10  ;;  %vm402_vm4 = vcmp.eq.s32.totalorder %v1257_v52, %v1144_v1 }
  0x60   :  { %vm403_vm5 = vcmp.eq.s32.totalorder %v1257_v52, %v1154_v9  ;;  %vm430_vm6 = vcmp.eq.s32.totalorder %v1261_v53, %v1144_v1  ;;  %vm431_vm7 = vcmp.eq.s32.totalorder %v1261_v53, %v1154_v9  ;;  %v410_v5 = vsel %vm402_vm4, 1.0, %v1068_v28 }
  0x61   :  { %v279_v3 = vadd.f32 %v272_v56, %v254_v62  ;;  %v280_v4 = vadd.f32 %v273_v57, %v255_v63  ;;  %v411_v6 = vsel %vm403_vm5, 1.0, %v1068_v28  ;;  %v438_v7 = vsel %vm430_vm6, 1.0, %v1068_v28 }
  0x62   :  { %v439_v8 = vsel %vm431_vm7, 1.0, %v1068_v28  ;;  %vm458_vm8 = vcmp.eq.s32.totalorder %v1267_v58, %v1144_v1  ;;  %vm459_vm9 = vcmp.eq.s32.totalorder %v1267_v58, %v1154_v9  ;;  %v446_v13 = vadd.f32 %v438_v7, %v410_v5 }
  0x63   :  { %v883_v10 = vpack.c.bf16 %v280_v4, %v279_v3  ;;  %v447_v18 = vadd.f32 %v439_v8, %v411_v6  ;;  %v466_v23 = vsel %vm458_vm8, 1.0, %v1068_v28  ;;  %v467_v29 = vsel %vm459_vm9, 1.0, %v1068_v28 }
  0x64   :  { %vm486_vm10 = vcmp.eq.s32.totalorder %v1271_v59, %v1144_v1  ;;  %vm487_vm11 = vcmp.eq.s32.totalorder %v1271_v59, %v1154_v9  ;;  %vm514_vm12 = vcmp.eq.s32.totalorder %v1275_v60, %v1144_v1  ;;  %v474_v30 = vadd.f32 %v466_v23, %v446_v13 }
  0x65   :  { %884 = vmatprep.subr.bf16.mxu0 %v883_v10  ;;  %v475_v31 = vadd.f32 %v467_v29, %v447_v18  ;;  %v494_v32 = vsel %vm486_vm10, 1.0, %v1068_v28  ;;  %v495_v33 = vsel %vm487_vm11, 1.0, %v1068_v28  ;;  %vm515_vm13 = vcmp.eq.s32.totalorder %v1275_v60, %v1154_v9 }
  0x66   :  { %v522_v34 = vsel %vm514_vm12, 1.0, %v1068_v28  ;;  %vm542_vm14 = vcmp.eq.s32.totalorder %v1279_v61, %v1144_v1  ;;  %vm543_vm15 = vcmp.eq.s32.totalorder %v1279_v61, %v1154_v9  ;;  %886 = vmatpush3.bf16.msra.mxu0 %v883_v10  ;;  %v502_v35 = vadd.f32 %v494_v32, %v474_v30 }
  0x67   :  { %v503_v36 = vadd.f32 %v495_v33, %v475_v31  ;;  %v523_v37 = vsel %vm515_vm13, 1.0, %v1068_v28  ;;  %v550_v38 = vsel %vm542_vm14, 1.0, %v1068_v28  ;;  %v551_v39 = vsel %vm543_vm15, 1.0, %v1068_v28 }
  0x68   :  { %vm570_vm2 = vcmp.eq.s32.totalorder %v1283_v0, %v1144_v1  ;;  %vm571_vm3 = vcmp.eq.s32.totalorder %v1283_v0, %v1154_v9  ;;  %vm598_vm4 = vcmp.eq.s32.totalorder %v1287_v2, %v1144_v1  ;;  %v530_v40 = vadd.f32 %v522_v34, %v502_v35 }
  0x69   :  { %v531_v41 = vadd.f32 %v523_v37, %v503_v36  ;;  %v578_v42 = vsel %vm570_vm2, 1.0, %v1068_v28  ;;  %v579_v43 = vsel %vm571_vm3, 1.0, %v1068_v28  ;;  %vm599_vm5 = vcmp.eq.s32.totalorder %v1287_v2, %v1154_v9 }
  0x6a   :  { %v606_v44 = vsel %vm598_vm4, 1.0, %v1068_v28  ;;  %vm92_vm6 = vcmp.eq.s32.totalorder %v1177_v19, %v1158_v11  ;;  %vm93_vm7 = vcmp.eq.s32.totalorder %v1177_v19, %v1161_v12  ;;  %v558_v45 = vadd.f32 %v550_v38, %v530_v40 }
  0x6b   :  { %v559_v46 = vadd.f32 %v551_v39, %v531_v41  ;;  %v607_v1 = vsel %vm599_vm5, 1.0, %v1068_v28  ;;  %v99_v47 = vsel %vm92_vm6, 1.0, %v1068_v28  ;;  %v100_v48 = vsel %vm93_vm7, 1.0, %v1068_v28 }
  0x6c   :  { %vm117_vm8 = vcmp.eq.s32.totalorder %v1181_v20, %v1158_v11  ;;  %vm118_vm9 = vcmp.eq.s32.totalorder %v1181_v20, %v1161_v12  ;;  %vm142_vm10 = vcmp.eq.s32.totalorder %v1185_v21, %v1158_v11  ;;  %v586_v9 = vadd.f32 %v578_v42, %v558_v45 }
  0x6d   :  { %v587_v49 = vadd.f32 %v579_v43, %v559_v46  ;;  %v124_v50 = vsel %vm117_vm8, 1.0, %v1068_v28  ;;  %v125_v51 = vsel %vm118_vm9, 1.0, %v1068_v28  ;;  %vm143_vm11 = vcmp.eq.s32.totalorder %v1185_v21, %v1161_v12 }
  0x6e   :  { %v131_v54 = vadd.f32 %v124_v50, %v99_v47  ;;  %v132_v55 = vadd.f32 %v125_v51, %v100_v48  ;;  %v149_v56 = vsel %vm142_vm10, 1.0, %v1068_v28  ;;  %v614_v57 = vadd.f32 %v606_v44, %v586_v9 }
  0x6f   :  { %v615_v62 = vadd.f32 %v607_v1, %v587_v49  ;;  %v150_v63 = vsel %vm143_vm11, 1.0, %v1068_v28  ;;  %vm167_vm12 = vcmp.eq.s32.totalorder %v1189_v22, %v1158_v11  ;;  %vm168_vm13 = vcmp.eq.s32.totalorder %v1189_v22, %v1161_v12 }
  0x70   :  { %v156_v3 = vadd.f32 %v149_v56, %v131_v54  ;;  %v157_v4 = vadd.f32 %v150_v63, %v132_v55  ;;  %v174_v5 = vsel %vm167_vm12, 1.0, %v1068_v28  ;;  %v175_v7 = vsel %vm168_vm13, 1.0, %v1068_v28 }
  0x71   :  { %v895_v6 = vpack.c.bf16 %v615_v62, %v614_v57  ;;  %vm192_vm14 = vcmp.eq.s32.totalorder %v1194_v24, %v1158_v11  ;;  %vm193_vm15 = vcmp.eq.s32.totalorder %v1194_v24, %v1161_v12  ;;  %vm217_vm2 = vcmp.eq.s32.totalorder %v1198_v25, %v1158_v11 }
  0x72   :  { %v181_v8 = vadd.f32 %v174_v5, %v156_v3  ;;  %v182_v10 = vadd.f32 %v175_v7, %v157_v4  ;;  %v199_v13 = vsel %vm192_vm14, 1.0, %v1068_v28  ;;  %v200_v18 = vsel %vm193_vm15, 1.0, %v1068_v28 }
  0x73   :  { %896 = vmatprep.subr.bf16.mxu1 %v895_v6  ;;  %vm218_vm3 = vcmp.eq.s32.totalorder %v1198_v25, %v1161_v12  ;;  %vm242_vm4 = vcmp.eq.s32.totalorder %v1202_v26, %v1158_v11  ;;  %vm243_vm5 = vcmp.eq.s32.totalorder %v1202_v26, %v1161_v12  ;;  %v224_v30 = vsel %vm217_vm2, 1.0, %v1068_v28 }
  0x74   :  { %898 = vmatpush3.bf16.msra.mxu1 %v895_v6  ;;  %v206_v23 = vadd.f32 %v199_v13, %v181_v8  ;;  %v207_v29 = vadd.f32 %v200_v18, %v182_v10  ;;  %v225_v31 = vsel %vm218_vm3, 1.0, %v1068_v28  ;;  %v249_v32 = vsel %vm242_vm4, 1.0, %v1068_v28 }
  0x75   :  { %v250_v33 = vsel %vm243_vm5, 1.0, %v1068_v28  ;;  %vm267_vm6 = vcmp.eq.s32.totalorder %v1206_v27, %v1158_v11  ;;  %vm268_vm7 = vcmp.eq.s32.totalorder %v1206_v27, %v1161_v12  ;;  %vm404_vm8 = vcmp.eq.s32.totalorder %v1257_v52, %v1158_v11 }
  0x76   :  { %v231_v34 = vadd.f32 %v224_v30, %v206_v23  ;;  %v232_v35 = vadd.f32 %v225_v31, %v207_v29  ;;  %v274_v36 = vsel %vm267_vm6, 1.0, %v1068_v28  ;;  %v275_v37 = vsel %vm268_vm7, 1.0, %v1068_v28 }
  0x77   :  { %vm405_vm9 = vcmp.eq.s32.totalorder %v1257_v52, %v1161_v12  ;;  %vm432_vm10 = vcmp.eq.s32.totalorder %v1261_v53, %v1158_v11  ;;  %vm433_vm11 = vcmp.eq.s32.totalorder %v1261_v53, %v1161_v12  ;;  %v412_v40 = vsel %vm404_vm8, 1.0, %v1068_v28 }
  0x78   :  { %v256_v38 = vadd.f32 %v249_v32, %v231_v34  ;;  %v257_v39 = vadd.f32 %v250_v33, %v232_v35  ;;  %v413_v41 = vsel %vm405_vm9, 1.0, %v1068_v28  ;;  %v440_v42 = vsel %vm432_vm10, 1.0, %v1068_v28 }
  0x79   :  { %v441_v43 = vsel %vm433_vm11, 1.0, %v1068_v28  ;;  %vm460_vm12 = vcmp.eq.s32.totalorder %v1267_v58, %v1158_v11  ;;  %vm461_vm13 = vcmp.eq.s32.totalorder %v1267_v58, %v1161_v12  ;;  %v448_v46 = vadd.f32 %v440_v42, %v412_v40 }
  0x7a   :  { %v281_v44 = vadd.f32 %v274_v36, %v256_v38  ;;  %v282_v45 = vadd.f32 %v275_v37, %v257_v39  ;;  %v449_v1 = vadd.f32 %v441_v43, %v413_v41  ;;  %v468_v47 = vsel %vm460_vm12, 1.0, %v1068_v28 }
  0x7b   :  { %v469_v48 = vsel %vm461_vm13, 1.0, %v1068_v28  ;;  %vm488_vm14 = vcmp.eq.s32.totalorder %v1271_v59, %v1158_v11  ;;  %vm489_vm15 = vcmp.eq.s32.totalorder %v1271_v59, %v1161_v12  ;;  %v476_v49 = vadd.f32 %v468_v47, %v448_v46 }
  0x7c   :  { %v887_v9 = vpack.c.bf16 %v282_v45, %v281_v44  ;;  %v477_v50 = vadd.f32 %v469_v48, %v449_v1  ;;  %v496_v51 = vsel %vm488_vm14, 1.0, %v1068_v28  ;;  %v497_v54 = vsel %vm489_vm15, 1.0, %v1068_v28 }
  0x7d   :  { %vm516_vm2 = vcmp.eq.s32.totalorder %v1275_v60, %v1158_v11  ;;  %vm517_vm3 = vcmp.eq.s32.totalorder %v1275_v60, %v1161_v12  ;;  %vm544_vm4 = vcmp.eq.s32.totalorder %v1279_v61, %v1158_v11  ;;  %v504_v55 = vadd.f32 %v496_v51, %v476_v49 }
  0x7e   :  { %888 = vmatprep.subr.bf16.mxu0 %v887_v9  ;;  %v505_v56 = vadd.f32 %v497_v54, %v477_v50  ;;  %v524_v57 = vsel %vm516_vm2, 1.0, %v1068_v28  ;;  %v525_v62 = vsel %vm517_vm3, 1.0, %v1068_v28  ;;  %vm545_vm5 = vcmp.eq.s32.totalorder %v1279_v61, %v1161_v12 }
  0x7f   :  { %v552_v63 = vsel %vm544_vm4, 1.0, %v1068_v28  ;;  %vm572_vm6 = vcmp.eq.s32.totalorder %v1283_v0, %v1158_v11  ;;  %vm573_vm7 = vcmp.eq.s32.totalorder %v1283_v0, %v1161_v12  ;;  %890 = vmatpush3.bf16.msra.mxu0 %v887_v9  ;;  %v532_v3 = vadd.f32 %v524_v57, %v504_v55 }
  0x80   :  { %v533_v4 = vadd.f32 %v525_v62, %v505_v56  ;;  %v553_v5 = vsel %vm545_vm5, 1.0, %v1068_v28  ;;  %v580_v6 = vsel %vm572_vm6, 1.0, %v1068_v28  ;;  %v581_v7 = vsel %vm573_vm7, 1.0, %v1068_v28 }
  0x81   :  { %vm600_vm8 = vcmp.eq.s32.totalorder %v1287_v2, %v1158_v11  ;;  %vm601_vm9 = vcmp.eq.s32.totalorder %v1287_v2, %v1161_v12  ;;  %vm94_vm10 = vcmp.eq.s32.totalorder %v1177_v19, %v1164_v14  ;;  %v560_v8 = vadd.f32 %v552_v63, %v532_v3 }
  0x82   :  { %v561_v10 = vadd.f32 %v553_v5, %v533_v4  ;;  %v608_v13 = vsel %vm600_vm8, 1.0, %v1068_v28  ;;  %v609_v18 = vsel %vm601_vm9, 1.0, %v1068_v28  ;;  %vm95_vm11 = vcmp.eq.s32.totalorder %v1177_v19, %v1167_v15 }
  0x83   :  { %v101_v23 = vsel %vm94_vm10, 1.0, %v1068_v28  ;;  %vm119_vm12 = vcmp.eq.s32.totalorder %v1181_v20, %v1164_v14  ;;  %vm120_vm13 = vcmp.eq.s32.totalorder %v1181_v20, %v1167_v15  ;;  %v588_v11 = vadd.f32 %v580_v6, %v560_v8 }
  0x84   :  { %v589_v12 = vadd.f32 %v581_v7, %v561_v10  ;;  %v102_v29 = vsel %vm95_vm11, 1.0, %v1068_v28  ;;  %v126_v30 = vsel %vm119_vm12, 1.0, %v1068_v28  ;;  %v127_v31 = vsel %vm120_vm13, 1.0, %v1068_v28 }
  0x85   :  { %v133_v32 = vadd.f32 %v126_v30, %v101_v23  ;;  %vm144_vm14 = vcmp.eq.s32.totalorder %v1185_v21, %v1164_v14  ;;  %vm145_vm15 = vcmp.eq.s32.totalorder %v1185_v21, %v1167_v15  ;;  %v616_v33 = vadd.f32 %v608_v13, %v588_v11 }
  0x86   :  { %v617_v34 = vadd.f32 %v609_v18, %v589_v12  ;;  %v134_v35 = vadd.f32 %v127_v31, %v102_v29  ;;  %v151_v36 = vsel %vm144_vm14, 1.0, %v1068_v28  ;;  %v152_v37 = vsel %vm145_vm15, 1.0, %v1068_v28 }
  0x87   :  { %v158_v38 = vadd.f32 %v151_v36, %v133_v32  ;;  %vm169_vm2 = vcmp.eq.s32.totalorder %v1189_v22, %v1164_v14  ;;  %vm170_vm3 = vcmp.eq.s32.totalorder %v1189_v22, %v1167_v15  ;;  %vm194_vm4 = vcmp.eq.s32.totalorder %v1194_v24, %v1164_v14 }
  0x88   :  { %v899_v39 = vpack.c.bf16 %v617_v34, %v616_v33  ;;  %v159_v40 = vadd.f32 %v152_v37, %v134_v35  ;;  %v176_v41 = vsel %vm169_vm2, 1.0, %v1068_v28  ;;  %v177_v42 = vsel %vm170_vm3, 1.0, %v1068_v28 }
  0x89   :  { %v183_v43 = vadd.f32 %v176_v41, %v158_v38  ;;  %vm195_vm5 = vcmp.eq.s32.totalorder %v1194_v24, %v1167_v15  ;;  %vm219_vm6 = vcmp.eq.s32.totalorder %v1198_v25, %v1164_v14  ;;  %v201_v45 = vsel %vm194_vm4, 1.0, %v1068_v28 }
  0x8a   :  { %900 = vmatprep.subr.bf16.mxu1 %v899_v39  ;;  %v184_v44 = vadd.f32 %v177_v42, %v159_v40  ;;  %v202_v46 = vsel %vm195_vm5, 1.0, %v1068_v28  ;;  %vm220_vm7 = vcmp.eq.s32.totalorder %v1198_v25, %v1167_v15  ;;  %v226_v47 = vsel %vm219_vm6, 1.0, %v1068_v28 }
  0x8b   :  { %902 = vmatpush3.bf16.msra.mxu1 %v899_v39  ;;  %v208_v1 = vadd.f32 %v201_v45, %v183_v43  ;;  %v227_v48 = vsel %vm220_vm7, 1.0, %v1068_v28  ;;  %vm244_vm8 = vcmp.eq.s32.totalorder %v1202_v26, %v1164_v14  ;;  %vm245_vm9 = vcmp.eq.s32.totalorder %v1202_v26, %v1167_v15 }
  0x8c   :  { %v209_v9 = vadd.f32 %v202_v46, %v184_v44  ;;  %v251_v49 = vsel %vm244_vm8, 1.0, %v1068_v28  ;;  %vm269_vm10 = vcmp.eq.s32.totalorder %v1206_v27, %v1164_v14  ;;  %v252_v51 = vsel %vm245_vm9, 1.0, %v1068_v28 }
  0x8d   :  { %v233_v50 = vadd.f32 %v226_v47, %v208_v1  ;;  %vm270_vm11 = vcmp.eq.s32.totalorder %v1206_v27, %v1167_v15  ;;  %v276_v54 = vsel %vm269_vm10, 1.0, %v1068_v28  ;;  %vm406_vm12 = vcmp.eq.s32.totalorder %v1257_v52, %v1164_v14 }
  0x8e   :  { %v234_v55 = vadd.f32 %v227_v48, %v209_v9  ;;  %v277_v56 = vsel %vm270_vm11, 1.0, %v1068_v28  ;;  %vm407_vm13 = vcmp.eq.s32.totalorder %v1257_v52, %v1167_v15  ;;  %v414_v62 = vsel %vm406_vm12, 1.0, %v1068_v28 }
  0x8f   :  { %v258_v57 = vadd.f32 %v251_v49, %v233_v50  ;;  %v415_v63 = vsel %vm407_vm13, 1.0, %v1068_v28  ;;  %vm434_vm14 = vcmp.eq.s32.totalorder %v1261_v53, %v1164_v14  ;;  %vm435_vm15 = vcmp.eq.s32.totalorder %v1261_v53, %v1167_v15 }
  0x90   :  { %v259_v3 = vadd.f32 %v252_v51, %v234_v55  ;;  %v442_v4 = vsel %vm434_vm14, 1.0, %v1068_v28  ;;  %vm462_vm2 = vcmp.eq.s32.totalorder %v1267_v58, %v1164_v14  ;;  %v443_v6 = vsel %vm435_vm15, 1.0, %v1068_v28 }
  0x91   :  { %v283_v5 = vadd.f32 %v276_v54, %v258_v57  ;;  %v450_v7 = vadd.f32 %v442_v4, %v414_v62  ;;  %vm463_vm3 = vcmp.eq.s32.totalorder %v1267_v58, %v1167_v15  ;;  %v451_v10 = vadd.f32 %v443_v6, %v415_v63 }
  0x92   :  { %v284_v8 = vadd.f32 %v277_v56, %v259_v3  ;;  %v470_v13 = vsel %vm462_vm2, 1.0, %v1068_v28  ;;  %v471_v18 = vsel %vm463_vm3, 1.0, %v1068_v28  ;;  %vm490_vm4 = vcmp.eq.s32.totalorder %v1271_v59, %v1164_v14 }
  0x93   :  { %v478_v23 = vadd.f32 %v470_v13, %v450_v7  ;;  %vm491_vm5 = vcmp.eq.s32.totalorder %v1271_v59, %v1167_v15  ;;  %vm518_vm6 = vcmp.eq.s32.totalorder %v1275_v60, %v1164_v14  ;;  %v479_v12 = vadd.f32 %v471_v18, %v451_v10 }
  0x94   :  { %v891_v11 = vpack.c.bf16 %v284_v8, %v283_v5  ;;  %v498_v29 = vsel %vm490_vm4, 1.0, %v1068_v28  ;;  %v499_v30 = vsel %vm491_vm5, 1.0, %v1068_v28  ;;  %vm519_vm7 = vcmp.eq.s32.totalorder %v1275_v60, %v1167_v15 }
  0x95   :  { %v506_v31 = vadd.f32 %v498_v29, %v478_v23  ;;  %v526_v32 = vsel %vm518_vm6, 1.0, %v1068_v28  ;;  %vm546_vm8 = vcmp.eq.s32.totalorder %v1279_v61, %v1164_v14  ;;  %v507_v33 = vadd.f32 %v499_v30, %v479_v12  ;;  %v71_v29 = vld [vmem:[#allocation7 + $0x10] sm:$0xff] }
  0x96   :  { %892 = vmatprep.subr.bf16.mxu0 %v891_v11  ;;  %v527_v34 = vsel %vm519_vm7, 1.0, %v1068_v28  ;;  %vm547_vm9 = vcmp.eq.s32.totalorder %v1279_v61, %v1167_v15  ;;  %v554_v35 = vsel %vm546_vm8, 1.0, %v1068_v28  ;;  %vm574_vm10 = vcmp.eq.s32.totalorder %v1283_v0, %v1164_v14 }
  0x97   :  { %v534_v36 = vadd.f32 %v526_v32, %v506_v31  ;;  %v555_v37 = vsel %vm547_vm9, 1.0, %v1068_v28  ;;  %vm575_vm11 = vcmp.eq.s32.totalorder %v1283_v0, %v1167_v15  ;;  %894 = vmatpush3.bf16.msra.mxu0 %v891_v11  ;;  %v535_v38 = vadd.f32 %v527_v34, %v507_v33  ;;  %v70_v11 = vld [vmem:[#allocation7 + $0x8] sm:$0xff] }
  0x98   :  { %v582_v39 = vsel %vm574_vm10, 1.0, %v1068_v28  ;;  %v583_v40 = vsel %vm575_vm11, 1.0, %v1068_v28  ;;  %vm602_vm12 = vcmp.eq.s32.totalorder %v1287_v2, %v1164_v14  ;;  %vm603_vm13 = vcmp.eq.s32.totalorder %v1287_v2, %v1167_v15 }
  0x99   :  { %v562_v41 = vadd.f32 %v554_v35, %v534_v36  ;;  %v610_v42 = vsel %vm602_vm12, 1.0, %v1068_v28  ;;  %vm96_vm14 = vcmp.eq.s32.totalorder %v1177_v19, %v1170_v16  ;;  %v563_v43 = vadd.f32 %v555_v37, %v535_v38  ;;  %v75_v37 = vld [vmem:[#allocation8 + $0x10] sm:$0xff] }
  0x9a   :  { %v611_v44 = vsel %vm603_vm13, 1.0, %v1068_v28  ;;  %v103_v45 = vsel %vm96_vm14, 1.0, %v1068_v28  ;;  %vm121_vm15 = vcmp.eq.s32.totalorder %v1181_v20, %v1170_v16  ;;  %vm146_vm2 = vcmp.eq.s32.totalorder %v1185_v21, %v1170_v16 }
  0x9b   :  { %v590_v46 = vadd.f32 %v582_v39, %v562_v41  ;;  %v128_v14 = vsel %vm121_vm15, 1.0, %v1068_v28  ;;  %vm171_vm3 = vcmp.eq.s32.totalorder %v1189_v22, %v1170_v16  ;;  %v591_v15 = vadd.f32 %v583_v40, %v563_v43 }
  0x9c   :  { %v135_v1 = vadd.f32 %v128_v14, %v103_v45  ;;  %v153_v19 = vsel %vm146_vm2, 1.0, %v1068_v28  ;;  %v178_v47 = vsel %vm171_vm3, 1.0, %v1068_v28  ;;  %vm196_vm4 = vcmp.eq.s32.totalorder %v1194_v24, %v1170_v16 }
  0x9d   :  { %v618_v48 = vadd.f32 %v610_v42, %v590_v46  ;;  %vm221_vm5 = vcmp.eq.s32.totalorder %v1198_v25, %v1170_v16  ;;  %vm246_vm6 = vcmp.eq.s32.totalorder %v1202_v26, %v1170_v16  ;;  %v619_v20 = vadd.f32 %v611_v44, %v591_v15 }
  0x9e   :  { %v160_v21 = vadd.f32 %v153_v19, %v135_v1  ;;  %v203_v22 = vsel %vm196_vm4, 1.0, %v1068_v28  ;;  %v228_v9 = vsel %vm221_vm5, 1.0, %v1068_v28  ;;  %v253_v49 = vsel %vm246_vm6, 1.0, %v1068_v28 }
  0x9f   :  { %vm271_vm7 = vcmp.eq.s32.totalorder %v1206_v27, %v1170_v16  ;;  %vm299_vm8 = vcmask 1041408   ;;  %vm408_vm9 = vcmp.eq.s32.totalorder %v1257_v52, %v1170_v16  ;;  %vm409_vm10 = vcmp.eq.s32.totalorder %v1257_v52, %v1173_v17 }
  0xa0   :  { %v903_v24 = vpack.c.bf16 %v619_v20, %v618_v48  ;;  %v185_v25 = vadd.f32 %v178_v47, %v160_v21  ;;  %v278_v26 = vsel %vm271_vm7, 1.0, %v1068_v28  ;;  %v416_v50 = vsel %vm408_vm9, 1.0, %v1068_v28 }
  0xa1   :  { %v417_v51 = vsel %vm409_vm10, 1.0, %v1068_v28  ;;  %vm436_vm11 = vcmp.eq.s32.totalorder %v1261_v53, %v1170_v16  ;;  %vm437_vm12 = vcmp.eq.s32.totalorder %v1261_v53, %v1173_v17  ;;  %vm464_vm13 = vcmp.eq.s32.totalorder %v1267_v58, %v1170_v16 }
  0xa2   :  { %904 = vmatprep.subr.bf16.mxu1 %v903_v24  ;;  %v210_v27 = vadd.f32 %v203_v22, %v185_v25  ;;  %v444_v52 = vsel %vm436_vm11, 1.0, %v1068_v28  ;;  %v445_v54 = vsel %vm437_vm12, 1.0, %v1068_v28  ;;  %vm465_vm14 = vcmp.eq.s32.totalorder %v1267_v58, %v1173_v17 }
  0xa3   :  { %906 = vmatpush3.bf16.msra.mxu1 %v903_v24  ;;  %v452_v55 = vadd.f32 %v444_v52, %v416_v50  ;;  %v453_v56 = vadd.f32 %v445_v54, %v417_v51  ;;  %v472_v57 = vsel %vm464_vm13, 1.0, %v1068_v28  ;;  %v473_v62 = vsel %vm465_vm14, 1.0, %v1068_v28 }
  0xa4   :  { %v235_v53 = vadd.f32 %v228_v9, %v210_v27  ;;  %vm492_vm15 = vcmp.eq.s32.totalorder %v1271_v59, %v1170_v16  ;;  %vm493_vm2 = vcmp.eq.s32.totalorder %v1271_v59, %v1173_v17  ;;  %vm520_vm3 = vcmp.eq.s32.totalorder %v1275_v60, %v1170_v16 }
  0xa5   :  { %v480_v63 = vadd.f32 %v472_v57, %v452_v55  ;;  %v481_v3 = vadd.f32 %v473_v62, %v453_v56  ;;  %v500_v58 = vsel %vm492_vm15, 1.0, %v1068_v28  ;;  %v501_v4 = vsel %vm493_vm2, 1.0, %v1068_v28 }
  0xa6   :  { %v260_v5 = vadd.f32 %v253_v49, %v235_v53  ;;  %vm521_vm4 = vcmp.eq.s32.totalorder %v1275_v60, %v1173_v17  ;;  %v528_v6 = vsel %vm520_vm3, 1.0, %v1068_v28  ;;  %vm548_vm5 = vcmp.eq.s32.totalorder %v1279_v61, %v1170_v16 }
  0xa7   :  { %v508_v7 = vadd.f32 %v500_v58, %v480_v63  ;;  %v509_v59 = vadd.f32 %v501_v4, %v481_v3  ;;  %v529_v8 = vsel %vm521_vm4, 1.0, %v1068_v28  ;;  %vm549_vm6 = vcmp.eq.s32.totalorder %v1279_v61, %v1173_v17 }
  0xa8   :  { %v285_v10 = vadd.f32 %v278_v26, %v260_v5  ;;  %v556_v13 = vsel %vm548_vm5, 1.0, %v1068_v28  ;;  %v557_v18 = vsel %vm549_vm6, 1.0, %v1068_v28  ;;  %vm576_vm7 = vcmp.eq.s32.totalorder %v1283_v0, %v1170_v16 }
  0xa9   :  { %v536_v60 = vadd.f32 %v528_v6, %v508_v7  ;;  %v537_v23 = vadd.f32 %v529_v8, %v509_v59  ;;  %vm577_vm9 = vcmp.eq.s32.totalorder %v1283_v0, %v1173_v17  ;;  %v584_v12 = vsel %vm576_vm7, 1.0, %v1068_v28 }
  0xaa   :  { %853 = vmatprep.subr.msk.mxu0 %vm299_vm8, %v285_v10  ;;  %v585_v61 = vsel %vm577_vm9, 1.0, %v1068_v28  ;;  %vm604_vm10 = vcmp.eq.s32.totalorder %v1287_v2, %v1170_v16  ;;  %vm605_vm11 = vcmp.eq.s32.totalorder %v1287_v2, %v1173_v17  ;;  %vm635_vm12 = vcmask 1043456   ;;  %v72_v16 = vld [vmem:[#allocation7 + $0x18] sm:$0xff]  ;;  %v74_v2 = vld [vmem:[#allocation8 + $0x8] sm:$0xff] }
  0xab   :  { %v564_v30 = vadd.f32 %v556_v13, %v536_v60  ;;  %v565_v31 = vadd.f32 %v557_v18, %v537_v23  ;;  %854 = vmatpush3.msk.msra.mxu0 %vm299_vm8, %v285_v10  ;;  %v612_v0 = vsel %vm604_vm10, 1.0, %v1068_v28  ;;  %v613_v32 = vsel %vm605_vm11, 1.0, %v1068_v28  ;;  %v76_v28 = vld [vmem:[#allocation8 + $0x18] sm:$0xff] }
  0xac   :  { %856 = vmatmul.mubr.msk.f32.vlgmr.msra.gmra.mrb[0].mxu0 %vm286_vm0, %v70_v11  ;;  %vm1069_vm13 = vmmov 1  }
  0xad   :  { %v592_v33 = vadd.f32 %v584_v12, %v564_v30  ;;  %v593_v34 = vadd.f32 %v585_v61, %v565_v31  ;;  %858 = vmatprep.mubr.msk.f32.mxu0 %vm286_vm0, %v71_v29  ;;  %vm908_vm14 = vmpackc.low %vm635_vm12, %vm1069_vm13 }
  0xaf   :  { %v620_v35 = vadd.f32 %v612_v0, %v592_v33  ;;  %v621_v36 = vadd.f32 %v613_v32, %v593_v34 }
  0xb0   :  { %859 = vmatmul.mubr.msk.f32.gmra.mrb[2].mxu0 %vm286_vm0, %v72_v16 }
  0xb1   :  { %v907_v17 = vpack.c.bf16 %v621_v36, %v620_v35 }
  0xb3   :  { %909 = vmatprep.subr.msk.bf16.mxu1 %vm908_vm14, %v907_v17 }
  0xb4   :  { %912 = vmatpush3.bf16.msk.msra.mxu1 %vm908_vm14, %v907_v17 }
  0xb7   :  { %878 = vmatmul.mubr.msk.f32.vlgmr.msra.gmra.mrb[0].mxu1 %vm622_vm1, %v74_v2 }
  0xb8   :  { %880 = vmatprep.mubr.msk.f32.mxu1 %vm622_vm1, %v75_v37 }
  0xbb   :  { %881 = vmatmul.mubr.msk.f32.gmra.mrb[2].mxu1 %vm622_vm1, %v76_v28 }
 0x17f   :  { %v857_v38 = vpop.f32.mrb[0].mxu0 }
 0x180   :  { %v389_v39 = vmul.f32 0.125, %v857_v38  ;;  %v369_v40 = vpop.f32.mrb[1].mxu0 }
 0x181   :  { %v388_v41 = vmul.f32 0.125, %v369_v40 }
 0x182   :  { %922 = vtanh.f32 %v389_v39 }
 0x183   :  { %924 = vtanh.f32 %v388_v41  ;;  %v860_v42 = vpop.f32.mrb[2].mxu0 }
 0x184   :  { %v391_v43 = vmul.f32 0.125, %v860_v42  ;;  %v379_v44 = vpop.f32.mrb[3].mxu0 }
 0x185   :  { %v390_v45 = vmul.f32 0.125, %v379_v44 }
 0x186   :  { %926 = vtanh.f32 %v391_v43 }
 0x187   :  { %928 = vtanh.f32 %v390_v45 }
 0x18a   :  { %v879_v46 = vpop.f32.mrb[0].mxu1 }
 0x18b   :  { %v725_v14 = vmul.f32 0.125, %v879_v46  ;;  %v705_v15 = vpop.f32.mrb[1].mxu1 }
 0x18c   :  { %v923_v1 = vpop.eup %922  ;;  %v724_v19 = vmul.f32 0.125, %v705_v15 }
 0x18d   :  { %v925_v47 = vpop.eup %924  ;;  %v746_v48 = vmul.f32 %v923_v1, %v923_v1  ;;  %930 = vtanh.f32 %v725_v14 }
 0x18e   :  { %v745_v20 = vmul.f32 %v925_v47, %v925_v47  ;;  %932 = vtanh.f32 %v724_v19  ;;  %v882_v21 = vpop.f32.mrb[2].mxu1 }
 0x18f   :  { %v727_v22 = vmul.f32 0.125, %v882_v21  ;;  %v715_v9 = vpop.f32.mrb[3].mxu1 }
 0x190   :  { %v927_v49 = vpop.eup %926  ;;  %v749_v24 = vadd.f32 %v746_v48, %v745_v20  ;;  %v726_v25 = vmul.f32 0.125, %v715_v9 }
 0x191   :  { %v929_v26 = vpop.eup %928  ;;  %934 = vtanh.f32 %v727_v22  ;;  %v748_v50 = vmul.f32 %v927_v49, %v927_v49 }
 0x192   :  { %v747_v51 = vmul.f32 %v929_v26, %v929_v26  ;;  %936 = vtanh.f32 %v726_v25 }
 0x194   :  { %v750_v27 = vadd.f32 %v749_v24, %v747_v51 }
 0x196   :  { %v751_v52 = vadd.f32 %v750_v27, %v748_v50 }
 0x197   :  { %v931_v54 = vpop.eup %930 }
 0x198   :  { %v933_v55 = vpop.eup %932  ;;  %v733_v56 = vmul.f32 %v931_v54, %v923_v1  ;;  %v767_v57 = vmul.f32 %v931_v54, %v931_v54  ;;  %v752_v62 = vrot.slane %v751_v52, 4 }
 0x199   :  { %v732_v53 = vmul.f32 %v933_v55, %v925_v47  ;;  %v766_v63 = vmul.f32 %v933_v55, %v933_v55 }
 0x19a   :  { %v753_v3 = vadd.f32 %v752_v62, %v751_v52 }
 0x19b   :  { %v935_v58 = vpop.eup %934  ;;  %v736_v4 = vadd.f32 %v733_v56, %v732_v53  ;;  %v770_v5 = vadd.f32 %v767_v57, %v766_v63 }
 0x19c   :  { %v937_v6 = vpop.eup %936  ;;  %v754_v7 = vrot.slane %v753_v3, 2  ;;  %v735_v59 = vmul.f32 %v935_v58, %v927_v49  ;;  %v769_v18 = vmul.f32 %v935_v58, %v935_v58 }
 0x19d   :  { %v734_v8 = vmul.f32 %v937_v6, %v929_v26  ;;  %v768_v10 = vmul.f32 %v937_v6, %v937_v6 }
 0x19e   :  { %v755_v13 = vadd.f32 %v754_v7, %v753_v3 }
 0x19f   :  { %v737_v60 = vadd.f32 %v736_v4, %v734_v8  ;;  %v771_v23 = vadd.f32 %v770_v5, %v768_v10 }
 0x1a0   :  { %v756_v11 = vrot.slane %v755_v13, 1 }
 0x1a1   :  { %v772_v12 = vadd.f32 %v771_v23, %v769_v18  ;;  %v738_v61 = vadd.f32 %v737_v60, %v735_v59 }
 0x1a2   :  { %v757_v29 = vadd.f32 %v756_v11, %v755_v13 }
 0x1a3   :  { %v773_v30 = vrot.slane %v772_v12, 4  ;;  %v739_v36 = vrot.slane %v738_v61, 4 }
 0x1a4   :  { %938 = vrsqrt.f32 %v757_v29  ;;  %vm760_vm0 = vcmp.eq.f32.partialorder %v757_v29, inf  ;;  %v763_v37 = vand.u32 2147483648, %v757_v29  ;;  %vm762_vm1 = vcmp.eq.f32.partialorder %v757_v29, 0.0 }
 0x1a5   :  { %v774_v31 = vadd.f32 %v773_v30, %v772_v12  ;;  %v740_v38 = vadd.f32 %v739_v36, %v738_v61 }
 0x1a7   :  { %v775_v0 = vrot.slane %v774_v31, 2  ;;  %v741_v45 = vrot.slane %v740_v38, 2 }
 0x1a9   :  { %v776_v32 = vadd.f32 %v775_v0, %v774_v31  ;;  %v742_v14 = vadd.f32 %v741_v45, %v740_v38 }
 0x1ab   :  { %v777_v33 = vrot.slane %v776_v32, 1  ;;  %v743_v15 = vrot.slane %v742_v14, 1 }
 0x1ad   :  { %v778_v34 = vadd.f32 %v777_v33, %v776_v32  ;;  %v744_v1 = vadd.f32 %v743_v15, %v742_v14 }
 0x1ae   :  { %v939_v16 = vpop.eup %938 }
 0x1af   :  { %940 = vrsqrt.f32 %v778_v34  ;;  %v759_v35 = vmul.f32 %v939_v16, %v757_v29  ;;  %vm781_vm8 = vcmp.eq.f32.partialorder %v778_v34, inf  ;;  %v784_v40 = vand.u32 2147483648, %v778_v34 }
 0x1b0   :  { %vm783_vm15 = vcmp.eq.f32.partialorder %v778_v34, 0.0 }
 0x1b1   :  { %v761_v17 = vsel %vm760_vm0, %v757_v29, %v759_v35 }
 0x1b2   :  { %v764_v39 = vsel %vm762_vm1, %v763_v37, %v761_v17 }
 0x1b3   :  { %v765_v43 = vmax.f32 %v764_v39, 1e-12 }
 0x1b9   :  { %v941_v2 = vpop.eup %940 }
 0x1ba   :  { %v780_v28 = vmul.f32 %v941_v2, %v778_v34 }
 0x1bc   :  { %v782_v41 = vsel %vm781_vm8, %v778_v34, %v780_v28 }
 0x1bd   :  { %v785_v42 = vsel %vm783_vm15, %v784_v40, %v782_v41 }
 0x1be   :  { %v786_v44 = vmax.f32 %v785_v42, 1e-12 }
 0x1c0   :  { %v787_v46 = vmul.f32 %v786_v44, %v765_v43 }
 0x1c2   :  { %942 = vrcp.f32 %v787_v46 }
 0x1cc   :  { %v943_v19 = vpop.eup %942 }
 0x1cd   :  { %v789_v47 = vmul.f32 %v943_v19, %v744_v1 }
 0x1cf   :  { %790 = vst [vmem:[#allocation10] sm:$0x1] %v789_v47 }
 0x1d0   :  { %1043 = shalt.err (!%p1040_p8)
}
 0x1d1   :  { %s1044_s14 = scalar_lea.hbm %s1625_s4, 16 }
 0x1d2   :  { %p1045_p9 = scmp.ne.s32.totalorder %s1625_s4, %s1044_s14  ;;  %p1048_p10 = scmp.lt.u32.totalorder %s1044_s14, %s1625_s4 }
 0x1d4   :  { %p1050_p11 = pnand %p1048_p10, %p1045_p9 }
 0x1d6   :  { %1053 = shalt.err (!%p1050_p11)
}
 0x1d7   :  { %800 = dma.vmem_to_hbm [thread:$0]  %s798_s10, 16, %s1625_s4, [#allocation4]  }
 0x1d8   :  { %1060 = dma.done.wait [#allocation4], 16  }
 0x1d9   :  { %1061 = vsyncadd [#allocation4], 4294967280 }
 0x1da   :  { %804 = vsyncpa [#allocation3], 1 }
 0x1db   :  { %805 = vsyncpa [#allocation6], 1 }
 0x1dc   :  { %806 = vsyncpa [#allocation9], 1 }
 0x1dd   :  { %807 = vsyncpa [#allocation4], 1 }

</bundles_post_ra>
